<compile_context>
chip_gen: v7x
topology: tpu7x:2x2x1
jax: 0.10.0
libtpu: 0.0.40
codegen_flags: <defaults>
</compile_context>

<pallas_src>
import jax
import jax.numpy as jnp
import numpy as np
from jax import lax
from jax.experimental import pallas as pl
from jax.experimental.pallas import tpu as pltpu


# ----------------------------------------------------------------------------
# Kernel
# ----------------------------------------------------------------------------
def basic_block_kernel(x_ref, a1_ref, a2_ref, b1_ref, b2_ref, out_ref, y1pad_ref):
    """One batch group (NB elements) per grid step.

    x_ref    : (NB, H+2, W*Cin)        f32 lane-packed rows, zero row at top/bottom
    a1_ref   : (3*W*Cin,  W*Cout)      bf16 merged conv1 band matrix (BN1 scale folded)
    a2_ref   : (3*W*Cout, W*Cout)      bf16 merged conv2 band matrix (BN2 scale folded)
    b1_ref   : (1, W*Cout)             f32 lane-tiled BN1 bias
    b2_ref   : (1, W*Cout)             f32 lane-tiled BN2 bias
    out_ref  : (NB, H, W*Cout)         f32
    y1pad_ref: (NB, H+2, W*Cout)       bf16 VMEM scratch (H-padded conv1 output)
    """
    NB, Hp2, WCi = x_ref.shape
    H = Hp2 - 2
    WCo = out_ref.shape[-1]
    bf = jnp.bfloat16
    M = NB * H

    # ---- conv1 (+ folded BN1 scale): one merged-tap MXU matmul -------------
    x_mid_f32 = x_ref[:, pl.ds(1, H), :]                      # (NB,H,WCi) f32 (residual)
    up1 = x_ref[:, pl.ds(0, H), :].astype(bf)                 # rows h-1 (zero at h=0)
    mid1 = x_mid_f32.astype(bf)                               # rows h
    dn1 = x_ref[:, pl.ds(2, H), :].astype(bf)                 # rows h+1 (zero at h=H-1)
    cat1 = jnp.concatenate([up1, mid1, dn1], axis=-1).reshape(M, 3 * WCi)
    acc1 = jnp.dot(cat1, a1_ref[...], preferred_element_type=jnp.float32)
    y1 = jnp.maximum(acc1 + b1_ref[...], 0.0)                 # (M, WCo) f32

    # ---- stash relu(bn1(conv1)) in an H-padded bf16 scratch for the ky taps -
    zrow = jnp.zeros((NB, 1, WCo), bf)
    y1pad_ref[:, pl.ds(0, 1), :] = zrow
    y1pad_ref[:, pl.ds(H + 1, 1), :] = zrow
    y1pad_ref[:, pl.ds(1, H), :] = y1.astype(bf).reshape(NB, H, WCo)

    # ---- conv2 (+ folded BN2 scale): one merged-tap MXU matmul -------------
    up2 = y1pad_ref[:, pl.ds(0, H), :]
    mid2 = y1pad_ref[:, pl.ds(1, H), :]
    dn2 = y1pad_ref[:, pl.ds(2, H), :]
    cat2 = jnp.concatenate([up2, mid2, dn2], axis=-1).reshape(M, 3 * WCo)
    acc2 = jnp.dot(cat2, a2_ref[...], preferred_element_type=jnp.float32)

    # ---- bn2 bias + residual + relu -----------------------------------------
    y2 = jnp.maximum(acc2 + b2_ref[...] + x_mid_f32.reshape(M, WCi), 0.0)
    out_ref[...] = y2.reshape(NB, H, WCo).astype(out_ref.dtype)


# ----------------------------------------------------------------------------
# Weight folding (host-side numpy): 3x3 conv -> single merged band matrix
# ----------------------------------------------------------------------------
def _merged_band_matrix(w_hwio, W):
    """Fold the kx (width) taps into banded matmul matrices and stack ky taps.

    w_hwio : np.ndarray (3, 3, Cin, Cout)
    returns np.ndarray (3*W*Cin, W*Cout):
      rows [ky*W*Cin : (ky+1)*W*Cin] map a packed input row (lane = w_in*Cin+ci)
      shifted by (ky-1) in H to a packed output row (lane = w_out*Cout+co),
      with w_out = w_in - kx + 1 (padding=1 along W).
    """
    KH, KW, Cin, Cout = w_hwio.shape
    A = np.zeros((KH, W * Cin, W * Cout), np.float32)
    for ky in range(KH):
        for kx in range(KW):
            blk = w_hwio[ky, kx]                              # (Cin, Cout)
            for w_in in range(W):
                w_out = w_in - kx + 1
                if 0 <= w_out < W:
                    A[ky,
                      w_in * Cin:(w_in + 1) * Cin,
                      w_out * Cout:(w_out + 1) * Cout] = blk
    return A.reshape(KH * W * Cin, W * Cout)


# ----------------------------------------------------------------------------
# Jitted forward (layout plumbing + pallas_call under one jit)
# ----------------------------------------------------------------------------
@jax.jit
def _forward_impl(x_nchw, A1, A2, b1_t, b2_t):
    N, Cin, H, W = x_nchw.shape
    WCi = W * Cin
    WCo = b1_t.shape[-1]
    Cout = WCo // W

    # NCHW -> NHWC -> lane-packed rows (N, H, W*Cin); pad one zero row top/bottom.
    x_rows = jnp.transpose(x_nchw, (0, 2, 3, 1)).reshape(N, H, WCi).astype(jnp.float32)
    x_pad = jnp.pad(x_rows, ((0, 0), (1, 1), (0, 0)))

    # 2 grid steps when possible (keeps v7x's 2 TensorCores busy, minimal
    # per-step overhead); each step folds NB batch elements into matmul M.
    G = 2 if (N % 2 == 0 and N >= 2) else 1
    NB = N // G

    out_rows = pl.pallas_call(
        basic_block_kernel,
        out_shape=jax.ShapeDtypeStruct((N, H, WCo), jnp.float32),
        grid=(G,),
        in_specs=[
            pl.BlockSpec((NB, H + 2, WCi), lambda g: (g, 0, 0)),   # padded input rows
            pl.BlockSpec((3 * WCi, WCo), lambda g: (0, 0)),        # merged conv1 bands
            pl.BlockSpec((3 * WCo, WCo), lambda g: (0, 0)),        # merged conv2 bands
            pl.BlockSpec((1, WCo), lambda g: (0, 0)),              # bias1
            pl.BlockSpec((1, WCo), lambda g: (0, 0)),              # bias2
        ],
        out_specs=pl.BlockSpec((NB, H, WCo), lambda g: (g, 0, 0)),
        scratch_shapes=[pltpu.VMEM((NB, H + 2, WCo), jnp.bfloat16)],
        compiler_params=pltpu.CompilerParams(
            dimension_semantics=("parallel",)),
    )(x_pad, A1, A2, b1_t, b2_t)

    # (N, H, W*Cout) -> NCHW
    return jnp.transpose(out_rows.reshape(N, H, W, Cout), (0, 3, 1, 2))


def basic_block_forward(x_nchw, w1_oihw, w2_oihw,
                        gamma1, beta1, mean1, var1,
                        gamma2, beta2, mean2, var2,
                        eps=1e-5):
    """NCHW in / NCHW out, matching the PyTorch module (eval-mode BN)."""
    N, Cin, H, W = x_nchw.shape
    Cout = w1_oihw.shape[0]
    assert Cin == Cout, "module only runs when in_channel == out_channel"
    WCi, WCo = W * Cin, W * Cout
    assert WCi % 128 == 0 and WCo % 128 == 0, "lane packing needs W*C % 128 == 0"
    assert H % 8 == 0, "H must be a multiple of 8 for sublane-aligned blocks"

    # ---- fold inference-mode BN into per-channel scale/bias (host side) ----
    g1, b1, m1, v1 = (np.asarray(a, np.float32) for a in (gamma1, beta1, mean1, var1))
    g2, b2, m2, v2 = (np.asarray(a, np.float32) for a in (gamma2, beta2, mean2, var2))
    s1 = g1 / np.sqrt(v1 + eps); bias1 = b1 - m1 * s1
    s2 = g2 / np.sqrt(v2 + eps); bias2 = b2 - m2 * s2

    # ---- OIHW -> HWIO, fold BN scale into output channels, build merged bands
    w1_hwio = np.transpose(np.asarray(w1_oihw, np.float32), (2, 3, 1, 0)) * s1
    w2_hwio = np.transpose(np.asarray(w2_oihw, np.float32), (2, 3, 1, 0)) * s2
    A1 = jnp.asarray(_merged_band_matrix(w1_hwio, W), dtype=jnp.bfloat16)
    A2 = jnp.asarray(_merged_band_matrix(w2_hwio, W), dtype=jnp.bfloat16)

    # lane-tiled biases (lane = w*Cout + co)
    b1_t = jnp.asarray(np.tile(bias1, W).reshape(1, WCo), jnp.float32)
    b2_t = jnp.asarray(np.tile(bias2, W).reshape(1, WCo), jnp.float32)

    return _forward_impl(x_nchw, A1, A2, b1_t, b2_t)


# ----------------------------------------------------------------------------
# Pure-JAX reference (for correctness checking)
# ----------------------------------------------------------------------------
def basic_block_reference(x_nchw, w1_oihw, w2_oihw,
                          gamma1, beta1, mean1, var1,
                          gamma2, beta2, mean2, var2,
                          eps=1e-5):
    x = jnp.transpose(x_nchw, (0, 2, 3, 1)).astype(jnp.float32)
    w1 = jnp.transpose(w1_oihw, (2, 3, 1, 0)).astype(jnp.float32)
    w2 = jnp.transpose(w2_oihw, (2, 3, 1, 0)).astype(jnp.float32)
    dn = ('NHWC', 'HWIO', 'NHWC')

    def bn(y, g, b, m, v):
        return (y - m) / jnp.sqrt(v + eps) * g + b

    out = lax.conv_general_dilated(x, w1, (1, 1), 'SAME', dimension_numbers=dn)
    out = jax.nn.relu(bn(out, gamma1, beta1, mean1, var1))
    out = lax.conv_general_dilated(out, w2, (1, 1), 'SAME', dimension_numbers=dn)
    out = bn(out, gamma2, beta2, mean2, var2)
    out = jax.nn.relu(out + x)
    return jnp.transpose(out, (0, 3, 1, 2))


if __name__ == "__main__":
    # Small shapes consistent with the module: N=4, C_in=C_out=8, 16x16
    # (W*C = 128 -> fully lane-dense packing; batch folds into matmul M=32 per
    #  grid step with grid=(2,)).
    N, C, H, W = 4, 8, 16, 16

    key = jax.random.PRNGKey(0)
    (kx, kw1, kw2,
     kg1, kb1, km1, kv1,
     kg2, kb2, km2, kv2) = jax.random.split(key, 11)

    x = jax.random.normal(kx, (N, C, H, W), dtype=jnp.float32)
    w1 = jax.random.normal(kw1, (C, C, 3, 3), dtype=jnp.float32) * 0.1   # OIHW
    w2 = jax.random.normal(kw2, (C, C, 3, 3), dtype=jnp.float32) * 0.1   # OIHW

    # Non-trivial inference-mode BatchNorm parameters.
    gamma1 = 1.0 + 0.1 * jax.random.normal(kg1, (C,), jnp.float32)
    beta1 = 0.1 * jax.random.normal(kb1, (C,), jnp.float32)
    mean1 = 0.1 * jax.random.normal(km1, (C,), jnp.float32)
    var1 = jax.random.uniform(kv1, (C,), jnp.float32, minval=0.5, maxval=1.5)
    gamma2 = 1.0 + 0.1 * jax.random.normal(kg2, (C,), jnp.float32)
    beta2 = 0.1 * jax.random.normal(kb2, (C,), jnp.float32)
    mean2 = 0.1 * jax.random.normal(km2, (C,), jnp.float32)
    var2 = jax.random.uniform(kv2, (C,), jnp.float32, minval=0.5, maxval=1.5)

    out = basic_block_forward(x, w1, w2,
                              gamma1, beta1, mean1, var1,
                              gamma2, beta2, mean2, var2)
    out = jax.block_until_ready(out)

    ref = basic_block_reference(x, w1, w2,
                                gamma1, beta1, mean1, var1,
                                gamma2, beta2, mean2, var2)
    ref = jax.block_until_ready(ref)

    assert out.shape == (N, C, H, W)
    # bf16 MXU operands (f32 accumulation) -> compare at bf16-level tolerance.
    np.testing.assert_allclose(np.asarray(out), np.asarray(ref),
                               rtol=3e-2, atol=3e-2)
    print("KERNEL_OK")
</pallas_src>

<mosaic_0001>
module attributes {stable_mosaic.version = 11 : i64} {
  func.func @basic_block_kernel(%arg0: i32, %arg1: memref<2x18x128xf32, #tpu.memory_space<vmem>>, %arg2: memref<384x128xbf16, #tpu.memory_space<vmem>>, %arg3: memref<384x128xbf16, #tpu.memory_space<vmem>>, %arg4: memref<1x128xf32, #tpu.memory_space<vmem>>, %arg5: memref<1x128xf32, #tpu.memory_space<vmem>>, %arg6: memref<2x16x128xf32, #tpu.memory_space<vmem>>, %arg7: memref<2x18x128xbf16, #tpu.memory_space<vmem>>) attributes {dimension_semantics = [#tpu.dimension_semantics<parallel>], iteration_bounds = array<i64: 2>, scalar_prefetch = 0 : i64, scratch_operands = 1 : i64, tpu.core_type = #tpu.core_type<tc>, window_params = [{transform_indices = @transform_0, window_bounds = array<i64: 2, 18, 128>}, {pipeline_mode = #tpu.pipeline_mode<synchronous>, transform_indices = @transform_1, window_bounds = array<i64: 384, 128>}, {pipeline_mode = #tpu.pipeline_mode<synchronous>, transform_indices = @transform_2, window_bounds = array<i64: 384, 128>}, {pipeline_mode = #tpu.pipeline_mode<synchronous>, transform_indices = @transform_3, window_bounds = array<i64: 1, 128>}, {pipeline_mode = #tpu.pipeline_mode<synchronous>, transform_indices = @transform_4, window_bounds = array<i64: 1, 128>}, {transform_indices = @transform_5, window_bounds = array<i64: 2, 16, 128>}]} {
    %c0 = arith.constant 0 : index
    %c1 = arith.constant 1 : index
    %c0_0 = arith.constant 0 : index
    %0 = vector.load %arg1[%c0, %c1, %c0_0] : memref<2x18x128xf32, #tpu.memory_space<vmem>>, vector<2x16x128xf32>
    %c0_1 = arith.constant 0 : index
    %c0_2 = arith.constant 0 : index
    %c0_3 = arith.constant 0 : index
    %1 = vector.load %arg1[%c0_1, %c0_2, %c0_3] : memref<2x18x128xf32, #tpu.memory_space<vmem>>, vector<2x16x128xf32>
    %2 = arith.truncf %1 : vector<2x16x128xf32> to vector<2x16x128xbf16>
    %3 = arith.truncf %0 : vector<2x16x128xf32> to vector<2x16x128xbf16>
    %c0_4 = arith.constant 0 : index
    %c2 = arith.constant 2 : index
    %c0_5 = arith.constant 0 : index
    %4 = vector.load %arg1[%c0_4, %c2, %c0_5] : memref<2x18x128xf32, #tpu.memory_space<vmem>>, vector<2x16x128xf32>
    %5 = arith.truncf %4 : vector<2x16x128xf32> to vector<2x16x128xbf16>
    %6 = tpu.concatenate %2, %3, %5 in 2 : vector<2x16x128xbf16>, vector<2x16x128xbf16>, vector<2x16x128xbf16> -> vector<2x16x384xbf16>
    %7 = vector.shape_cast %6 : vector<2x16x384xbf16> to vector<32x384xbf16>
    %c0_6 = arith.constant 0 : index
    %c0_7 = arith.constant 0 : index
    %8 = vector.load %arg2[%c0_6, %c0_7] : memref<384x128xbf16, #tpu.memory_space<vmem>>, vector<384x128xbf16>
    %cst = arith.constant dense<0.000000e+00> : vector<32x128xf32>
    %9 = tpu.matmul %7, %8, %cst {dimension_numbers = #tpu.dot_dimension_numbers<[1], [0], [0], [1], [0, 0, 1, 1], [], []>} : vector<32x384xbf16>, vector<384x128xbf16>, vector<32x128xf32> -> vector<32x128xf32>
    %c0_8 = arith.constant 0 : index
    %c0_9 = arith.constant 0 : index
    %10 = vector.load %arg4[%c0_8, %c0_9] : memref<1x128xf32, #tpu.memory_space<vmem>>, vector<1x128xf32>
    %11 = vector.broadcast %10 : vector<1x128xf32> to vector<32x128xf32>
    %12 = arith.addf %9, %11 : vector<32x128xf32>
    %cst_10 = arith.constant 0.000000e+00 : f32
    %13 = vector.broadcast %cst_10 : f32 to vector<32x128xf32>
    %14 = arith.maximumf %12, %13 : vector<32x128xf32>
    %cst_11 = arith.constant 0.000000e+00 : bf16
    %15 = vector.broadcast %cst_11 : bf16 to vector<2x1x128xbf16>
    %c0_12 = arith.constant 0 : index
    %c0_13 = arith.constant 0 : index
    %c0_14 = arith.constant 0 : index
    %16 = vector.load %arg7[%c0_12, %c0_13, %c0_14] : memref<2x18x128xbf16, #tpu.memory_space<vmem>>, vector<2x1x128xbf16>
    tpu.vector_store %arg7[%c0_12, %c0_13, %c0_14], %15 {strides = array<i32>} : memref<2x18x128xbf16, #tpu.memory_space<vmem>>, vector<2x1x128xbf16>,
    %c0_15 = arith.constant 0 : index
    %c17 = arith.constant 17 : index
    %c0_16 = arith.constant 0 : index
    %17 = vector.load %arg7[%c0_15, %c17, %c0_16] : memref<2x18x128xbf16, #tpu.memory_space<vmem>>, vector<2x1x128xbf16>
    tpu.vector_store %arg7[%c0_15, %c17, %c0_16], %15 {strides = array<i32>} : memref<2x18x128xbf16, #tpu.memory_space<vmem>>, vector<2x1x128xbf16>,
    %18 = arith.truncf %14 : vector<32x128xf32> to vector<32x128xbf16>
    %19 = vector.shape_cast %18 : vector<32x128xbf16> to vector<2x16x128xbf16>
    %c0_17 = arith.constant 0 : index
    %c1_18 = arith.constant 1 : index
    %c0_19 = arith.constant 0 : index
    %20 = vector.load %arg7[%c0_17, %c1_18, %c0_19] : memref<2x18x128xbf16, #tpu.memory_space<vmem>>, vector<2x16x128xbf16>
    tpu.vector_store %arg7[%c0_17, %c1_18, %c0_19], %19 {strides = array<i32>} : memref<2x18x128xbf16, #tpu.memory_space<vmem>>, vector<2x16x128xbf16>,
    %c0_20 = arith.constant 0 : index
    %c0_21 = arith.constant 0 : index
    %c0_22 = arith.constant 0 : index
    %21 = vector.load %arg7[%c0_20, %c0_21, %c0_22] : memref<2x18x128xbf16, #tpu.memory_space<vmem>>, vector<2x16x128xbf16>
    %c0_23 = arith.constant 0 : index
    %c1_24 = arith.constant 1 : index
    %c0_25 = arith.constant 0 : index
    %22 = vector.load %arg7[%c0_23, %c1_24, %c0_25] : memref<2x18x128xbf16, #tpu.memory_space<vmem>>, vector<2x16x128xbf16>
    %c0_26 = arith.constant 0 : index
    %c2_27 = arith.constant 2 : index
    %c0_28 = arith.constant 0 : index
    %23 = vector.load %arg7[%c0_26, %c2_27, %c0_28] : memref<2x18x128xbf16, #tpu.memory_space<vmem>>, vector<2x16x128xbf16>
    %24 = tpu.concatenate %21, %22, %23 in 2 : vector<2x16x128xbf16>, vector<2x16x128xbf16>, vector<2x16x128xbf16> -> vector<2x16x384xbf16>
    %25 = vector.shape_cast %24 : vector<2x16x384xbf16> to vector<32x384xbf16>
    %c0_29 = arith.constant 0 : index
    %c0_30 = arith.constant 0 : index
    %26 = vector.load %arg3[%c0_29, %c0_30] : memref<384x128xbf16, #tpu.memory_space<vmem>>, vector<384x128xbf16>
    %cst_31 = arith.constant dense<0.000000e+00> : vector<32x128xf32>
    %27 = tpu.matmul %25, %26, %cst_31 {dimension_numbers = #tpu.dot_dimension_numbers<[1], [0], [0], [1], [0, 0, 1, 1], [], []>} : vector<32x384xbf16>, vector<384x128xbf16>, vector<32x128xf32> -> vector<32x128xf32>
    %c0_32 = arith.constant 0 : index
    %c0_33 = arith.constant 0 : index
    %28 = vector.load %arg5[%c0_32, %c0_33] : memref<1x128xf32, #tpu.memory_space<vmem>>, vector<1x128xf32>
    %29 = vector.broadcast %28 : vector<1x128xf32> to vector<32x128xf32>
    %30 = arith.addf %27, %29 : vector<32x128xf32>
    %31 = vector.shape_cast %0 : vector<2x16x128xf32> to vector<32x128xf32>
    %32 = arith.addf %30, %31 : vector<32x128xf32>
    %cst_34 = arith.constant 0.000000e+00 : f32
    %33 = vector.broadcast %cst_34 : f32 to vector<32x128xf32>
    %34 = arith.maximumf %32, %33 : vector<32x128xf32>
    %35 = vector.shape_cast %34 : vector<32x128xf32> to vector<2x16x128xf32>
    %c0_35 = arith.constant 0 : index
    %c0_36 = arith.constant 0 : index
    %c0_37 = arith.constant 0 : index
    %36 = vector.load %arg6[%c0_35, %c0_36, %c0_37] : memref<2x16x128xf32, #tpu.memory_space<vmem>>, vector<2x16x128xf32>
    tpu.vector_store %arg6[%c0_35, %c0_36, %c0_37], %35 {strides = array<i32>} : memref<2x16x128xf32, #tpu.memory_space<vmem>>, vector<2x16x128xf32>,
    return
  }
  func.func @transform_0(%arg0: i32) -> (i32, i32, i32) {
    %c0_i32 = arith.constant 0 : i32
    %c0_i32_0 = arith.constant 0 : i32
    %c0_i32_1 = arith.constant 0 : i32
    return %arg0, %c0_i32, %c0_i32_0 : i32, i32, i32
  }
  func.func @transform_1(%arg0: i32) -> (i32, i32) {
    %c0_i32 = arith.constant 0 : i32
    %c0_i32_0 = arith.constant 0 : i32
    %c0_i32_1 = arith.constant 0 : i32
    return %c0_i32, %c0_i32_0 : i32, i32
  }
  func.func @transform_2(%arg0: i32) -> (i32, i32) {
    %c0_i32 = arith.constant 0 : i32
    %c0_i32_0 = arith.constant 0 : i32
    %c0_i32_1 = arith.constant 0 : i32
    return %c0_i32, %c0_i32_0 : i32, i32
  }
  func.func @transform_3(%arg0: i32) -> (i32, i32) {
    %c0_i32 = arith.constant 0 : i32
    %c0_i32_0 = arith.constant 0 : i32
    %c0_i32_1 = arith.constant 0 : i32
    return %c0_i32, %c0_i32_0 : i32, i32
  }
  func.func @transform_4(%arg0: i32) -> (i32, i32) {
    %c0_i32 = arith.constant 0 : i32
    %c0_i32_0 = arith.constant 0 : i32
    %c0_i32_1 = arith.constant 0 : i32
    return %c0_i32, %c0_i32_0 : i32, i32
  }
  func.func @transform_5(%arg0: i32) -> (i32, i32, i32) {
    %c0_i32 = arith.constant 0 : i32
    %c0_i32_0 = arith.constant 0 : i32
    %c0_i32_1 = arith.constant 0 : i32
    return %arg0, %c0_i32, %c0_i32_0 : i32, i32, i32
  }
}

</mosaic_0001>

<bundles_post_ra>
// kernel: _forward_impl.1
= control target key start
LH: loop header
LB: loop body
LE: loop exit
PB: predicated region body
PF: predicated region fallthrough
CT: control target
= control target key end

     0   :  { %s1369_s18 = smov 0   ;;  %s1606_s0 = inlined_call_operand.vmem [shape: f32[4,18,128], index: 0, kind: input, shape index: {}]   ;;  %s1607_s1 = inlined_call_operand.vmem [shape: bf16[384,128], index: 1, kind: input, shape index: {}]   ;;  %s1608_s2 = inlined_call_operand.vmem [shape: bf16[384,128], index: 2, kind: input, shape index: {}]   ;;  %s1609_s3 = inlined_call_operand.vmem [shape: f32[1,128], index: 3, kind: input, shape index: {}]   ;;  %s1610_s4 = inlined_call_operand.vmem [shape: f32[1,128], index: 4, kind: input, shape index: {}]   ;;  %s1611_s5 = inlined_call_operand.vmem [shape: f32[4,16,128], index: 5, kind: output, shape index: {}]  }
   0x1 LB: > { %s1075_s19 = sadd.s32 4294967295, %s1337_s18   ;;  %p1079_p0 = scmp.ge.s32.totalorder %s1337_s18, 1  ;;  %s1337_s18 = sphi %s1369_s18, %s15_s18  }
   0x2   : > { %p189_p1 = scmp.lt.s32.totalorder %s1337_s18, 3 }
   0x4   : > { %p190_p2 = pnand %p1079_p0, %p189_p1 }
   0x5   : > { %v1277_v0 = vld [vmem:[%s1607_s1 + $0x40] sm:$0xff] (!%p190_p2)   ;;  %v1280_v3 = vld [vmem:[%s1607_s1 + $0x48] sm:$0xff] (!%p190_p2)   ;;  %v1283_v6 = vld [vmem:[%s1607_s1 + $0x50] sm:$0xff] (!%p190_p2)   ;;  %s1080_s9 = sshll.u32 (!%p190_p2), %s1075_s19, 1  ;;  %vm553_vm0 = vcmask (!%p190_p2), 1040384   ;;  %vm624_vm5 = vcmask (!%p190_p2), 1043456  }
   0x6   : > { %193 = sbr.rel (%p190_p2) target bundleno = 523 (0x20b), region = 40  ;;  %v1278_v1 = vld [vmem:[%s1607_s1] sm:$0xff] (!%p190_p2)   ;;  %1152 = vmatprep.subr.bf16.mxu0 (!%p190_p2), %v1277_v0  ;;  %v1281_v4 = vld [vmem:[%s1607_s1 + $0x8] sm:$0xff] (!%p190_p2)   ;;  %v1284_v7 = vld [vmem:[%s1607_s1 + $0x10] sm:$0xff] (!%p190_p2)   ;;  %p220_p3 = scmp.lt.s32.totalorder (!%p190_p2), %s1080_s9, 3  ;;  %vm699_vm9 = vcmask (!%p190_p2), 1046528  }
   0x7   : > { %v1279_v2 = vld [vmem:[%s1607_s1 + $0x80] sm:$0xff] (!%p190_p2)   ;;  %1153 = vmatpush3.bf16.msra.mxu0 (!%p190_p2), %v1278_v1  ;;  %v1282_v5 = vld [vmem:[%s1607_s1 + $0x88] sm:$0xff] (!%p190_p2)   ;;  %v1285_v8 = vld [vmem:[%s1607_s1 + $0x90] sm:$0xff] (!%p190_p2)   ;;  %vm554_vm1 = vsmask.f32 (!%p190_p2), 256 }
   0x8   : > { %1228 = vmatprep.subr.bf16.mxu1 (!%p190_p2), %v1279_v2  ;;  %1154 = vmatprep.subr.bf16.mxu0 (!%p190_p2), %v1280_v3  ;;  %v1286_v9 = vld [vmem:[%s1607_s1 + $0x58] sm:$0xff] (!%p190_p2)   ;;  %v1289_v12 = vld [vmem:[%s1607_s1 + $0x60] sm:$0xff] (!%p190_p2)   ;;  %v1292_v15 = vld [vmem:[%s1607_s1 + $0x68] sm:$0xff] (!%p190_p2)   ;;  %vm562_vm3 = vsmask.f32 (!%p190_p2), 7938 }
   0x9   : > { %1229 = vmatpush3.bf16.msra.mxu1 (!%p190_p2), %v1279_v2  ;;  %v1287_v10 = vld [vmem:[%s1607_s1 + $0x18] sm:$0xff] (!%p190_p2)   ;;  %v1291_v13 = vld [vmem:[%s1607_s1 + $0xa0] sm:$0xff] (!%p190_p2)   ;;  %v1294_v16 = vld [vmem:[%s1607_s1 + $0xa8] sm:$0xff] (!%p190_p2)   ;;  %vm582_vm6 = vsmask.f32 (!%p190_p2), 4368 }
   0xa   : > { %1230 = vmatprep.subr.bf16.mxu1 (!%p190_p2), %v1282_v5  ;;  %v1288_v11 = vld [vmem:[%s1607_s1 + $0x98] sm:$0xff] (!%p190_p2)   ;;  %v1290_v14 = vld [vmem:[%s1607_s1 + $0x20] sm:$0xff] (!%p190_p2)   ;;  %v1293_v17 = vld [vmem:[%s1607_s1 + $0x28] sm:$0xff] (!%p190_p2)   ;;  %vm666_vm10 = vsmask.f32 (!%p190_p2), 7424 }
   0xb   : > { %1155 = vmatpush3.bf16.msra.mxu0 (!%p190_p2), %v1281_v4  ;;  %v1295_v18 = vld [vmem:[%s1607_s1 + $0x70] sm:$0xff] (!%p190_p2)   ;;  %v1298_v21 = vld [vmem:[%s1607_s1 + $0x78] sm:$0xff] (!%p190_p2)   ;;  %v1301_v42 = vld [vmem:[%s1608_s2 + $0x40] sm:$0xff] (!%p190_p2)  }
   0xc   : > { %1156 = vmatprep.subr.bf16.mxu0 (!%p190_p2), %v1283_v6  ;;  %v1297_v19 = vld [vmem:[%s1607_s1 + $0xb0] sm:$0xff] (!%p190_p2)   ;;  %v1299_v24 = vld [vmem:[%s1607_s1 + $0x38] sm:$0xff] (!%p190_p2)   ;;  %v1302_v43 = vld [vmem:[%s1608_s2] sm:$0xff] (!%p190_p2)  }
   0xd   : > { %1231 = vmatpush3.bf16.msra.mxu1 %v1282_v5  ;;  %s1619_s9 = smov (!%p220_p3, %s1080_s9), 3  ;;  %v1296_v20 = vld [vmem:[%s1607_s1 + $0x30] sm:$0xff]   ;;  %v1300_v28 = vld [vmem:[%s1607_s1 + $0xb8] sm:$0xff]   ;;  %v556_v44 = vld [vmem:[#allocation2] sm:$0x1] }
   0xe   : > { %1232 = vmatprep.subr.bf16.mxu1 %v1285_v8  ;;  %s1268_s29 = smul.u32 24, %s1619_s9  ;;  %vm1488_vm2 = vmand %vm553_vm0, %vm554_vm1  ;;  %v559_v46 = vld [vmem:[#allocation2 + $0xc] sm:$0x1]  ;;  %v564_v47 = vld [vmem:[#allocation2 + $0x8] sm:$0x1]  ;;  %s1147_s7 = sshll.u32 %s1619_s9, 4 }
   0xf   : > { %1157 = vmatpush3.bf16.msra.mxu0 %v1284_v7  ;;  %v557_v48 = vsel %vm1488_vm2, 0, %v556_v44  ;;  %v560_v49 = vsel %vm1488_vm2, 0, %v559_v46  ;;  %vm563_vm4 = vmand %vm553_vm0, %vm562_vm3  ;;  %v567_v50 = vld [vmem:[#allocation2 + $0x14] sm:$0x1]  ;;  %v1303_v51 = vld [vmem:[%s1608_s2 + $0x80] sm:$0xff]   ;;  %s231_s11 = scalar_lea.vmem %s1611_s5, %s1147_s7 }
  0x10   : > { %1158 = vmatprep.subr.bf16.mxu0 %v1286_v9  ;;  %s1440_s14 = scalar_lea.vmem %s1606_s0, %s1268_s29  ;;  %558 = vst [vmem:[#allocation2] sm:$0x1] %v557_v48  ;;  %561 = vst [vmem:[#allocation2 + $0xc] sm:$0x1] %v560_v49  ;;  %v565_v52 = vsel %vm563_vm4, 0, %v564_v47  ;;  %v568_v53 = vsel %vm563_vm4, 0, %v567_v50 }
  0x11   : > { %1233 = vmatpush3.bf16.msra.mxu1 %v1285_v8  ;;  %v1452_v22 = vld [vmem:[%s1440_s14 + $0x1] sm:$0xff]  ;;  %v1455_v23 = vld [vmem:[%s1440_s14 + $0x9] sm:$0xff]  ;;  %v1472_v34 = vld [vmem:[%s1440_s14 + $0x19] sm:$0xff]  ;;  %566 = vst [vmem:[#allocation2 + $0x8] sm:$0x1] %v565_v52 }
  0x12   : > { %1234 = vmatprep.subr.bf16.mxu1 %v1288_v11  ;;  %v244_v25 = vpack.c.bf16 %v1455_v23, %v1452_v22  ;;  %v246_v26 = vld [vmem:[%s1440_s14 + $0x2] sm:$0xff]  ;;  %v247_v27 = vld [vmem:[%s1440_s14 + $0xa] sm:$0xff]  ;;  %v248_v32 = vld [vmem:[%s1440_s14 + $0x1a] sm:$0xff]  ;;  %569 = vst [vmem:[#allocation2 + $0x14] sm:$0x1] %v568_v53 }
  0x13   : > { %1159 = vmatpush3.bf16.msra.mxu0 %v1287_v10  ;;  %v238_v29 = vld [vmem:[%s1440_s14] sm:$0xff]  ;;  %v239_v30 = vld [vmem:[%s1440_s14 + $0x8] sm:$0xff]  ;;  %v250_v31 = vpack.c.bf16 %v247_v27, %v246_v26  ;;  %v240_v39 = vld [vmem:[%s1440_s14 + $0x18] sm:$0xff] }
  0x14   : > { %1160 = vmatprep.subr.bf16.mxu0 %v1289_v12  ;;  %483 = vmatprep.mubr.bf16.mxu0 %v244_v25  ;;  %v249_v33 = vld [vmem:[%s1440_s14 + $0x22] sm:$0xff]  ;;  %v242_v36 = vpack.c.bf16 %v239_v30, %v238_v29  ;;  %v1307_v57 = vld [vmem:[%s1608_s2 + $0x50] sm:$0xff]   ;;  %v1310_v60 = vld [vmem:[%s1608_s2 + $0x58] sm:$0xff]  }
  0x15   : > { %1235 = vmatpush3.bf16.msra.mxu1 %v1288_v11  ;;  %v1475_v35 = vld [vmem:[%s1440_s14 + $0x21] sm:$0xff]  ;;  %1244 = vmatprep.mubr.bf16.mxu1 %v250_v31  ;;  %v251_v38 = vpack.c.bf16 %v249_v33, %v248_v32  ;;  %v1308_v58 = vld [vmem:[%s1608_s2 + $0x10] sm:$0xff]   ;;  %v1311_v61 = vld [vmem:[%s1608_s2 + $0x18] sm:$0xff]  }
  0x16   : > { %1236 = vmatprep.subr.bf16.mxu1 %v1291_v13  ;;  %v245_v37 = vpack.c.bf16 %v1475_v35, %v1472_v34  ;;  %v241_v40 = vld [vmem:[%s1440_s14 + $0x20] sm:$0xff]  ;;  %v1304_v54 = vld [vmem:[%s1608_s2 + $0x48] sm:$0xff]   ;;  %v1309_v59 = vld [vmem:[%s1608_s2 + $0x90] sm:$0xff]  }
  0x17   : > { %1161 = vmatpush3.bf16.msra.mxu0 %v1290_v14  ;;  %v243_v41 = vpack.c.bf16 %v241_v40, %v240_v39  ;;  %v1305_v55 = vld [vmem:[%s1608_s2 + $0x8] sm:$0xff]   ;;  %v1312_v62 = vld [vmem:[%s1608_s2 + $0x98] sm:$0xff]   ;;  %v1313_v63 = vld [vmem:[%s1608_s2 + $0x60] sm:$0xff]  }
  0x18   : > { %1162 = vmatprep.subr.bf16.mxu0 %v1292_v15  ;;  %v1306_v56 = vld [vmem:[%s1608_s2 + $0x88] sm:$0xff]   ;;  %v1314_v0 = vld [vmem:[%s1608_s2 + $0x20] sm:$0xff]   ;;  %v1319_v5 = vld [vmem:[%s1608_s2 + $0x70] sm:$0xff]  }
  0x19   : > { %1237 = vmatpush3.bf16.msra.mxu1 %v1291_v13  ;;  %v1315_v1 = vld [vmem:[%s1608_s2 + $0xa0] sm:$0xff]   ;;  %v1316_v2 = vld [vmem:[%s1608_s2 + $0x68] sm:$0xff]   ;;  %v1320_v6 = vld [vmem:[%s1608_s2 + $0x30] sm:$0xff]  }
  0x1a   : > { %1238 = vmatprep.subr.bf16.mxu1 %v1294_v16  ;;  %v1317_v3 = vld [vmem:[%s1608_s2 + $0x28] sm:$0xff]   ;;  %v1321_v7 = vld [vmem:[%s1608_s2 + $0xb0] sm:$0xff]   ;;  %v1325_v8 = vld [vmem:[%s1608_s2 + $0x78] sm:$0xff]  }
  0x1b   : > { %1163 = vmatpush3.bf16.msra.mxu0 %v1293_v17  ;;  %v1318_v4 = vld [vmem:[%s1608_s2 + $0xa8] sm:$0xff]   ;;  %v1326_v9 = vld [vmem:[%s1608_s2 + $0x38] sm:$0xff]   ;;  %v1085_v13 = vld [vmem:[%s1609_s3] ss:$0 sm:$0xff] }
  0x1c   : > { %1164 = vmatprep.subr.bf16.mxu0 %v1295_v18  ;;  %v1327_v10 = vld [vmem:[%s1608_s2 + $0xb8] sm:$0xff]   ;;  %vm1567_vm7 = vmand %vm624_vm5, %vm562_vm3  ;;  %v626_v48 = vld [vmem:[#allocation2] sm:$0xf] }
  0x1d   : > { %1239 = vmatpush3.bf16.msra.mxu1 %v1294_v16  ;;  %vm1572_vm8 = vmor %vm554_vm1, %vm582_vm6 }
  0x1e   : > { %1240 = vmatprep.subr.bf16.mxu1 %v1297_v19 }
  0x1f   : > { %1165 = vmatpush3.bf16.msra.mxu0 %v1296_v20 }
  0x20   : > { %1166 = vmatprep.subr.bf16.mxu0 %v1298_v21 }
  0x21   : > { %1241 = vmatpush3.bf16.msra.mxu1 %v1297_v19 }
  0x22   : > { %1242 = vmatprep.subr.bf16.mxu1 %v1300_v28 }
  0x23   : > { %1167 = vmatpush3.bf16.msra.mxu0 %v1299_v24 }
  0x24   : > { %1190 = vmatprep.subr.bf16.mxu0 %v1301_v42 }
  0x25   : > { %1243 = vmatpush3.bf16.msra.mxu1 %v1300_v28 }
  0x26   : > { %484 = vmatmul.mubr.bf16.vlgmr.msra.gmra.mrb[0].mxu0 %v242_v36  ;;  %1248 = vmatprep.subr.bf16.mxu1 %v1303_v51 }
  0x27   : > { %491 = vmatprep.mubr.bf16.mxu0 %v245_v37  ;;  %1191 = vmatpush3.bf16.msra.mxu0 %v1302_v43 }
  0x28   : > { %1245 = vmatmul.mubr.bf16.vlgmr.msra.gmra.mrb[0].mxu1 %v251_v38  ;;  %1192 = vmatprep.subr.bf16.mxu0 %v1304_v54 }
  0x29   : > { %1249 = vmatpush3.bf16.msra.mxu1 %v1303_v51 }
  0x2a   : > { %1250 = vmatprep.subr.bf16.mxu1 %v1306_v56 }
  0x2b   : > { %1193 = vmatpush3.bf16.msra.mxu0 %v1305_v55  ;;  %v1120_v55 = vld [vmem:[%s1610_s4] ss:$0 sm:$0xff] }
  0x2c   : > { %1194 = vmatprep.subr.bf16.mxu0 %v1307_v57 }
  0x2d   : > { %1251 = vmatpush3.bf16.msra.mxu1 %v1306_v56  ;;  %v630_v56 = vld [vmem:[#allocation2 + $0x8] sm:$0x1] }
  0x2e   : > { %492 = vmatmul.mubr.bf16.gmra.mrb[4].mxu0 %v243_v41  ;;  %1252 = vmatprep.subr.bf16.mxu1 %v1309_v59 }
  0x2f   : > { %1195 = vmatpush3.bf16.msra.mxu0 %v1308_v58 }
  0x30   : > { %1196 = vmatprep.subr.bf16.mxu0 %v1310_v60 }
  0x31   : > { %1253 = vmatpush3.bf16.msra.mxu1 %v1309_v59 }
  0x32   : > { %1254 = vmatprep.subr.bf16.mxu1 %v1312_v62 }
  0x33   : > { %1197 = vmatpush3.bf16.msra.mxu0 %v1311_v61 }
  0x34   : > { %1198 = vmatprep.subr.bf16.mxu0 %v1313_v63 }
  0x35   : > { %1255 = vmatpush3.bf16.msra.mxu1 %v1312_v62 }
  0x36   : > { %1256 = vmatprep.subr.bf16.mxu1 %v1315_v1 }
  0x37   : > { %1199 = vmatpush3.bf16.msra.mxu0 %v1314_v0 }
  0x38   : > { %1200 = vmatprep.subr.bf16.mxu0 %v1316_v2 }
  0x39   : > { %1257 = vmatpush3.bf16.msra.mxu1 %v1315_v1 }
  0x3a   : > { %1258 = vmatprep.subr.bf16.mxu1 %v1318_v4 }
  0x3b   : > { %1201 = vmatpush3.bf16.msra.mxu0 %v1317_v3 }
  0x3c   : > { %1202 = vmatprep.subr.bf16.mxu0 %v1319_v5  ;;  %v633_v5 = vld [vmem:[#allocation2 + $0xc] sm:$0xf] }
  0x3d   : > { %1259 = vmatpush3.bf16.msra.mxu1 %v1318_v4 }
  0x3e   : > { %1260 = vmatprep.subr.bf16.mxu1 %v1321_v7 }
  0x3f   : > { %1203 = vmatpush3.bf16.msra.mxu0 %v1320_v6 }
  0x40   : > { %1204 = vmatprep.subr.bf16.mxu0 %v1325_v8 }
  0x41   : > { %1261 = vmatpush3.bf16.msra.mxu1 %v1321_v7 }
  0x42   : > { %1262 = vmatprep.subr.bf16.mxu1 %v1327_v10 }
  0x43   : > { %1205 = vmatpush3.bf16.msra.mxu0 %v1326_v9 }
  0x45   : > { %1263 = vmatpush3.bf16.msra.mxu1 %v1327_v10 }
  0xf9   : > { %v1168_v11 = vpop.f32.mrb[0].mxu0 }
  0xfa   : > { %v1169_v12 = vpop.f32.mrb[1].mxu0 }
  0xfb   : > { %v1170_v14 = vadd.f32 %v1169_v12, %v1168_v11  ;;  %v1246_v15 = vpop.f32.mrb[0].mxu1  ;;  %v1171_v16 = vpop.f32.mrb[2].mxu0  ;;  %v637_v11 = vld [vmem:[#allocation2 + $0x14] sm:$0x1] }
  0xfc   : > { %v534_v17 = vpop.f32.mrb[1].mxu1  ;;  %v1172_v18 = vpop.f32.mrb[3].mxu0 }
  0xfd   : > { %v486_v19 = vadd.f32 %v1170_v14, %v1085_v13  ;;  %v1173_v20 = vadd.f32 %v1172_v18, %v1171_v16  ;;  %v1247_v21 = vpop.f32.mrb[2].mxu1 }
  0xfe   : > { %v537_v24 = vpop.f32.mrb[3].mxu1 }
  0xff   : > { %v535_v25 = vadd.f32 %v534_v17, %v486_v19  ;;  %v489_v26 = vadd.f32 %v1173_v20, %v1085_v13 }
 0x101   : > { %v549_v27 = vmax.f32 %v535_v25, 0.0  ;;  %v538_v28 = vadd.f32 %v537_v24, %v489_v26  ;;  %v1174_v29 = vpop.f32.mrb[4].mxu0 }
 0x102   : > { %v1175_v30 = vpop.f32.mrb[5].mxu0 }
 0x103   : > { %v1148_v31 = vpack.c.bf16 %v549_v27, %v549_v27  ;;  %v550_v32 = vmax.f32 %v538_v28, 0.0  ;;  %v1176_v33 = vadd.f32 %v1175_v30, %v1174_v29  ;;  %v1177_v36 = vpop.f32.mrb[6].mxu0 }
 0x104   : > { %v1178_v37 = vpop.f32.mrb[7].mxu0 }
 0x105   : > { %v585_v38 = vshrl.u32 %v1148_v31, 16  ;;  %v1149_v39 = vpack.c.bf16 %v550_v32, %v550_v32  ;;  %v494_v40 = vadd.f32 %v1176_v33, %v1085_v13  ;;  %v1179_v41 = vadd.f32 %v1178_v37, %v1177_v36 }
 0x106   : > { %v588_v43 = vshll.u32 %v1148_v31, 16 }
 0x107   : > { %v587_v42 = vrot.slane %v585_v38, 7  ;;  %v593_v44 = vshrl.u32 %v1149_v39, 16  ;;  %v543_v46 = vadd.f32 %v1246_v15, %v494_v40  ;;  %v497_v49 = vadd.f32 %v1179_v41, %v1085_v13 }
 0x108   : > { %v596_v52 = vshll.u32 %v1149_v39, 16 }
 0x109   : > { %v590_v50 = vor.u32 %v588_v43, %v587_v42  ;;  %v595_v51 = vrot.slane %v593_v44, 7  ;;  %v551_v53 = vmax.f32 %v543_v46, 0.0  ;;  %v591_v54 = vrot.slane %v587_v42, 4 }
 0x10a   : > { %v546_v57 = vadd.f32 %v1247_v21, %v497_v49 }
 0x10b   : > { %v627_v58 = vsel %vm1567_vm7, %v590_v50, %v626_v48  ;;  %v598_v59 = vor.u32 %v596_v52, %v595_v51  ;;  %v600_v60 = vrot.slane %v595_v51, 4  ;;  %v1150_v61 = vpack.c.bf16 %v551_v53, %v551_v53 }
 0x10c   : > { %628 = vst [vmem:[#allocation2] sm:$0xf] %v627_v58  ;;  %v552_v62 = vmax.f32 %v546_v57, 0.0 }
 0x10d   : > { %v599_v63 = vsel %vm1572_vm8, %v591_v54, %v598_v59  ;;  %v631_v0 = vsel %vm1488_vm2, %v600_v60, %v630_v56  ;;  %v602_v1 = vshrl.u32 %v1150_v61, 16  ;;  %v605_v4 = vshll.u32 %v1150_v61, 16 }
 0x10e   : > { %629 = vst [vmem:[#allocation2 + $0x4] sm:$0xf] %v599_v63  ;;  %632 = vst [vmem:[#allocation2 + $0x8] sm:$0x1] %v631_v0  ;;  %v1151_v2 = vpack.c.bf16 %v552_v62, %v552_v62 }
 0x10f   : > { %v604_v3 = vrot.slane %v602_v1, 7 }
 0x110   : > { %v610_v6 = vshrl.u32 %v1151_v2, 16  ;;  %v613_v9 = vshll.u32 %v1151_v2, 16 }
 0x111   : > { %v607_v7 = vor.u32 %v605_v4, %v604_v3  ;;  %v608_v12 = vrot.slane %v604_v3, 4 }
 0x112   : > { %v612_v8 = vrot.slane %v610_v6, 7 }
 0x113   : > { %v634_v10 = vsel %vm1567_vm7, %v607_v7, %v633_v5  ;;  %v640_v15 = vld [vmem:[#allocation2] sm:$0xf] }
 0x114   : > { %635 = vst [vmem:[#allocation2 + $0xc] sm:$0xf] %v634_v10  ;;  %v615_v13 = vor.u32 %v613_v9, %v612_v8  ;;  %v617_v14 = vrot.slane %v612_v8, 4  ;;  %v646_v17 = vld [vmem:[#allocation2] sm:$0xe] }
 0x115   : > { %v641_v16 = vld [vmem:[#allocation2 + $0x4] sm:$0xf]  ;;  %v1323_v21 = vld [vmem:[#allocation2 + $0x8] ss:$0 sps:$4 sm:$0x11]  }
 0x116   : > { %v616_v18 = vsel %vm1572_vm8, %v608_v12, %v615_v13  ;;  %v638_v19 = vsel %vm1488_vm2, %v617_v14, %v637_v11  ;;  %v1114_v20 = vcombine.low %v640_v15, %v641_v16  ;;  %v1118_v24 = vcombine.low %v646_v17, %v641_v16 }
 0x117   : > { %636 = vst [vmem:[#allocation2 + $0x10] sm:$0xf] %v616_v18  ;;  %639 = vst [vmem:[#allocation2 + $0x14] sm:$0x1] %v638_v19  ;;  %v701_v26 = vrot.slane %v1323_v21, 1  ;;  %v675_v28 = vshll.u32 %v1323_v21, 16 }
 0x118   : > { %v700_v25 = vrot.slane %v1118_v24, 1  ;;  %v670_v27 = vshll.u32 %v1114_v20, 16  ;;  %v668_v30 = vshrl.u32 %v1114_v20, 16 }
 0x119   : > { %v677_v33 = vrot.slane %v675_v28, 1 }
 0x11a   : > { %v702_v29 = vsel %vm699_vm9, %v700_v25, %v701_v26  ;;  %v672_v31 = vrot.slane %v670_v27, 1 }
 0x11b   : > { %1264 = vmatprep.mubr.bf16.mxu1 %v702_v29  ;;  %v642_v45 = vld [vmem:[#allocation2 + $0xc] sm:$0xf] }
 0x11c   : > { %v673_v32 = vor.u32 %v672_v31, %v668_v30  ;;  %v647_v38 = vld [vmem:[#allocation2 + $0xc] sm:$0xe] }
 0x11e   : > { %v678_v36 = vsel %vm666_vm10, %v673_v32, %v677_v33  ;;  %v643_v37 = vld [vmem:[#allocation2 + $0x10] sm:$0xf]  ;;  %v1329_v40 = vld [vmem:[#allocation2 + $0x14] ss:$0 sps:$4 sm:$0x11]  }
 0x11f   : > { %939 = vmatprep.mubr.bf16.mxu0 %v678_v36  ;;  %v1115_v39 = vcombine.low %v642_v45, %v643_v37  ;;  %v1119_v41 = vcombine.low %v647_v38, %v643_v37  ;;  %v704_v43 = vrot.slane %v1329_v40, 1  ;;  %v687_v46 = vshll.u32 %v1329_v40, 16 }
 0x120   : > { %940 = vmatmul.mubr.bf16.vlgmr.msra.gmra.mrb[8].mxu0 %v1114_v20 }
 0x121   : > { %v703_v42 = vrot.slane %v1119_v41, 1  ;;  %v682_v44 = vshll.u32 %v1115_v39, 16  ;;  %v680_v48 = vshrl.u32 %v1115_v39, 16  ;;  %v689_v51 = vrot.slane %v687_v46, 1 }
 0x123   : > { %v705_v47 = vsel %vm699_vm9, %v703_v42, %v704_v43  ;;  %v684_v49 = vrot.slane %v682_v44, 1 }
 0x124   : > { %1265 = vmatmul.mubr.bf16.vlgmr.msra.gmra.mrb[4].mxu1 %v705_v47 }
 0x125   : > { %v685_v50 = vor.u32 %v684_v49, %v680_v48 }
 0x127   : > { %v690_v52 = vsel %vm666_vm10, %v685_v50, %v689_v51 }
 0x128   : > { %947 = vmatprep.mubr.bf16.mxu0 %v690_v52 }
 0x129   : > { %948 = vmatmul.mubr.bf16.gmra.mrb[12].mxu0 %v1115_v39 }
 0x1f3   : > { %v1206_v53 = vpop.f32.mrb[8].mxu0 }
 0x1f4   : > { %v1207_v54 = vpop.f32.mrb[9].mxu0 }
 0x1f5   : > { %v1208_v56 = vadd.f32 %v1207_v54, %v1206_v53  ;;  %v1209_v57 = vpop.f32.mrb[10].mxu0 }
 0x1f6   : > { %v1210_v58 = vpop.f32.mrb[11].mxu0 }
 0x1f7   : > { %v1211_v59 = vadd.f32 %v1210_v58, %v1209_v57  ;;  %v1266_v60 = vpop.f32.mrb[4].mxu1  ;;  %v942_v61 = vadd.f32 %v1208_v56, %v1120_v55 }
 0x1f8   : > { %v990_v62 = vpop.f32.mrb[5].mxu1 }
 0x1f9   : > { %v991_v63 = vadd.f32 %v990_v62, %v942_v61  ;;  %v1267_v0 = vpop.f32.mrb[6].mxu1  ;;  %v945_v1 = vadd.f32 %v1211_v59, %v1120_v55 }
 0x1fa   : > { %v993_v2 = vpop.f32.mrb[7].mxu1 }
 0x1fb   : > { %v1005_v3 = vadd.f32 %v991_v63, %v1452_v22  ;;  %v994_v4 = vadd.f32 %v993_v2, %v945_v1 }
 0x1fc   : > { %v1212_v5 = vpop.f32.mrb[12].mxu0 }
 0x1fd   : > { %v1009_v6 = vmax.f32 %v1005_v3, 0.0  ;;  %v1006_v7 = vadd.f32 %v994_v4, %v1455_v23  ;;  %v1213_v8 = vpop.f32.mrb[13].mxu0 }
 0x1fe   : > { %v1214_v9 = vadd.f32 %v1213_v8, %v1212_v5  ;;  %v1215_v10 = vpop.f32.mrb[14].mxu0 }
 0x1ff   : > { %1013 = vst [vmem:[%s231_s11] sm:$0xff] %v1009_v6  ;;  %v1010_v11 = vmax.f32 %v1006_v7, 0.0  ;;  %v1216_v12 = vpop.f32.mrb[15].mxu0 }
 0x200   : > { %v950_v13 = vadd.f32 %v1214_v9, %v1120_v55  ;;  %v1217_v14 = vadd.f32 %v1216_v12, %v1215_v10 }
 0x201   : > { %1014 = vst [vmem:[%s231_s11 + $0x8] sm:$0xff] %v1010_v11 }
 0x202   : > { %v999_v15 = vadd.f32 %v1266_v60, %v950_v13  ;;  %v953_v22 = vadd.f32 %v1217_v14, %v1120_v55 }
 0x204   : > { %v1007_v16 = vadd.f32 %v999_v15, %v1472_v34  ;;  %v1002_v17 = vadd.f32 %v1267_v0, %v953_v22 }
 0x206   : > { %v1011_v18 = vmax.f32 %v1007_v16, 0.0  ;;  %v1008_v19 = vadd.f32 %v1002_v17, %v1475_v35 }
 0x208   : > { %1015 = vst [vmem:[%s231_s11 + $0x10] sm:$0xff] %v1011_v18  ;;  %v1012_v20 = vmax.f32 %v1008_v19, 0.0 }
 0x20a   : > { %1016 = vst [vmem:[%s231_s11 + $0x18] sm:$0xff] %v1012_v20 }
 0x20b PF: > { %s15_s18 = sadd.s32 1, %s1337_s18  }
 0x20c   : > { %p12_p4 = scmp.ge.s32.totalorder %s15_s18, 4  }
 0x20e   :  { %14 = sbr.rel (!%p12_p4) target bundleno = 1 (0x1), region = 70 }

</bundles_post_ra>
